<compile_context>
chip_gen: v5e
topology: v5e:2x2
jax: 0.10.0
libtpu: 0.0.40
codegen_flags: <defaults>
</compile_context>

<pallas_src>
import functools

import jax
import jax.numpy as jnp
from jax.experimental import pallas as pl
from jax.experimental.pallas import tpu as pltpu


def _round_up(x, m):
    return ((x + m - 1) // m) * m


# ----------------------------- Pallas kernel ------------------------------ #

def fused_gnn_kernel(a_ref, x_ref, w_ref, b_ref, pa_ref, bl_ref, o_ref, *,
                     num_layers):
    """Whole GNN forward (all GCN layers + folded masked global_add_pool / 2).

    a_ref  : (Np, Np)      bf16  normalized adjacency, loaded once, reused per layer
    x_ref  : (Np, Cp)      bf16  node features (channel-padded to 128 lanes)
    w_ref  : (L, Cp, Cp)   bf16  stacked, zero-padded layer weights (all L layers)
    b_ref  : (L-1, 1, Cp)  f32   stacked hidden-layer biases
    pa_ref : (B, Np)       f32   (0.5 * P * is_neighbor) @ A_hat  (pool folded w/ A)
    bl_ref : (B, Cp)       f32   rowsum(P_scaled) * final-layer bias
    o_ref  : (B, Cp)       f32   pooled graph representations
    """
    a = a_ref[...]          # A_hat resident on-chip across all hidden layers
    h = x_ref[...]          # running activations never leave VMEM/vregs
    for l in range(num_layers - 1):                    # static unroll (L small)
        # Contract the cheap (channel) side first, then the big A_hat matmul.
        xw = jnp.dot(h, w_ref[l], preferred_element_type=jnp.float32)
        z = jnp.dot(a, xw.astype(jnp.bfloat16),
                    preferred_element_type=jnp.float32)
        z = z + b_ref[l]                               # f32 epilogue on the VPU
        h = jnp.maximum(z, 0.0).astype(jnp.bfloat16)
    # Final layer with masked pooling folded in (linearity):
    #   P @ (A @ (h W_L) + b_L) == (P @ A) @ (h W_L) + (P @ 1) * b_L
    xw = jnp.dot(h, w_ref[num_layers - 1], preferred_element_type=jnp.float32)
    o_ref[...] = (jnp.dot(pa_ref[...], xw, preferred_element_type=jnp.float32)
                  + bl_ref[...]).astype(o_ref.dtype)


# ------------------------------ Pallas wrapper ------------------------------ #

def _gnn_forward_impl(params, a_hat, x, is_neighbor, pool_mat):
    n, c_in = x.shape
    b = pool_mat.shape[0]
    num_layers = len(params)
    c_dims = [c_in] + [w.shape[1] for (w, _) in params]
    c_pad = _round_up(max(c_dims), 128)   # lane-dense channel dims
    n_pad = _round_up(n, 128)             # lane-dense A_hat cols, 8-aligned sublanes

    # Zero padding is exact: padded channels stay zero through every layer and
    # padded node rows never reach the pooled output (PA is zero there).
    a_p = jnp.zeros((n_pad, n_pad), jnp.bfloat16).at[:n, :n].set(
        a_hat.astype(jnp.bfloat16))
    x_p = jnp.zeros((n_pad, c_pad), jnp.bfloat16).at[:n, :c_in].set(
        x.astype(jnp.bfloat16))
    w_stack = jnp.zeros((num_layers, c_pad, c_pad), jnp.bfloat16)
    for l, (w, _) in enumerate(params):
        w_stack = w_stack.at[l, :w.shape[0], :w.shape[1]].set(
            w.astype(jnp.bfloat16))
    b_hidden = jnp.zeros((num_layers - 1, 1, c_pad), jnp.float32)
    for l, (_, bias) in enumerate(params[:-1]):
        b_hidden = b_hidden.at[l, :, :bias.shape[1]].set(
            bias.astype(jnp.float32))

    # Fold neighbor mask and the fixed /2 into P, then fold the final layer's
    # A_hat aggregation into P as well:  PA = P_scaled @ A_hat  (tiny B x N).
    p_scaled = 0.5 * pool_mat * is_neighbor[None, :].astype(jnp.float32)
    pa = p_scaled @ a_hat.astype(jnp.float32)                       # (B, N) f32
    pa_p = jnp.zeros((b, n_pad), jnp.float32).at[:, :n].set(pa)
    rowsum = p_scaled.sum(axis=1, keepdims=True)                    # (B, 1)
    bias_final = params[-1][1].astype(jnp.float32)                  # (1, C_out)
    bl = jnp.zeros((b, c_pad), jnp.float32).at[:, :bias_final.shape[1]].set(
        rowsum * bias_final)

    kern = functools.partial(fused_gnn_kernel, num_layers=num_layers)
    out_p = pl.pallas_call(
        kern,
        out_shape=jax.ShapeDtypeStruct((b, c_pad), jnp.float32),
        grid=(1,),
        in_specs=[
            pl.BlockSpec((n_pad, n_pad), lambda i: (0, 0)),
            pl.BlockSpec((n_pad, c_pad), lambda i: (0, 0)),
            pl.BlockSpec((num_layers, c_pad, c_pad), lambda i: (0, 0, 0)),
            pl.BlockSpec((num_layers - 1, 1, c_pad), lambda i: (0, 0, 0)),
            pl.BlockSpec((b, n_pad), lambda i: (0, 0)),
            pl.BlockSpec((b, c_pad), lambda i: (0, 0)),
        ],
        out_specs=pl.BlockSpec((b, c_pad), lambda i: (0, 0)),
        compiler_params=pltpu.CompilerParams(
            dimension_semantics=("arbitrary",),
            vmem_limit_bytes=32 * 1024 * 1024,
        ),
    )(a_p, x_p, w_stack, b_hidden, pa_p, bl)

    out_channels = params[-1][0].shape[1]
    return out_p[:, :out_channels]


gnn_forward_pallas = jax.jit(_gnn_forward_impl)


# ------------------------------ model (glue) -------------------------------- #

def gcn_norm_dense(edge_index, num_nodes):
    """Dense A_hat matching PyG GCNConv's gcn_norm (add_self_loops=True).

    Uses .set(1.0) so duplicate edges coalesce instead of accumulating.
    """
    src, dst = edge_index[0], edge_index[1]
    a = jnp.zeros((num_nodes, num_nodes), jnp.float32)
    a = a.at[dst, src].set(1.0)                 # message src -> dst : A[dst, src]
    a = a + jnp.eye(num_nodes, dtype=jnp.float32)
    deg = a.sum(axis=1)                         # in-degree incl. self loop
    dinv = jnp.where(deg > 0.0, 1.0 / jnp.sqrt(deg), 0.0)
    return dinv[:, None] * a * dinv[None, :]


def init_params(key, in_channels, hidden_channels, out_channels, num_layers):
    """GCNConv params: glorot-uniform weight (C_in, C_out), zero bias."""
    dims = [in_channels] + [hidden_channels] * (num_layers - 1) + [out_channels]
    params = []
    for c_in, c_out in zip(dims[:-1], dims[1:]):
        key, sub = jax.random.split(key)
        limit = (6.0 / (c_in + c_out)) ** 0.5
        w = jax.random.uniform(sub, (c_in, c_out), jnp.float32, -limit, limit)
        bias = jnp.zeros((1, c_out), jnp.float32)
        params.append((w, bias))
    return params


def gnn_forward_reference(params, a_hat, x, is_neighbor, pool_mat):
    """Pure-JAX f32 reference matching the PyTorch module's forward."""
    h = x
    last = len(params) - 1
    for i, (w, bias) in enumerate(params):
        h = a_hat @ (h @ w) + bias
        if i < last:
            h = jnp.maximum(h, 0.0)
    p_scaled = 0.5 * pool_mat * is_neighbor[None, :]
    return p_scaled @ h


# ----------------------------------- main ----------------------------------- #

if __name__ == "__main__":
    key = jax.random.PRNGKey(0)

    # Small synthetic batched graph: 2 graphs x 8 nodes.
    num_graphs = 2
    nodes_per_graph = 8
    num_nodes = num_graphs * nodes_per_graph
    in_channels, hidden_channels, out_channels = 8, 32, 16
    num_layers = 3

    # Directed ring edges within each graph (both directions).
    src_list, dst_list = [], []
    for g in range(num_graphs):
        off = g * nodes_per_graph
        for i in range(nodes_per_graph):
            j = (i + 1) % nodes_per_graph
            src_list += [off + i, off + j]
            dst_list += [off + j, off + i]
    edge_index = jnp.array([src_list, dst_list], dtype=jnp.int32)

    # batch vector and one-hot pooling matrix P (B, N)
    batch = jnp.repeat(jnp.arange(num_graphs, dtype=jnp.int32), nodes_per_graph)
    pool_mat = (batch[None, :] ==
                jnp.arange(num_graphs, dtype=jnp.int32)[:, None]).astype(jnp.float32)

    # Exactly 2 neighbor nodes per graph (mirrors the module's assertion).
    is_neighbor = jnp.zeros((num_nodes,), jnp.float32)
    is_neighbor = is_neighbor.at[jnp.array([1, 2, 9, 10])].set(1.0)
    assert bool(jnp.all(pool_mat @ is_neighbor == 2.0))

    # Node features.
    key, kx = jax.random.split(key)
    x = jax.random.normal(kx, (num_nodes, in_channels), jnp.float32)

    # Parameters (deterministic) and normalized adjacency.
    params = init_params(jax.random.PRNGKey(0), in_channels, hidden_channels,
                         out_channels, num_layers)
    a_hat = gcn_norm_dense(edge_index, num_nodes)

    out = gnn_forward_pallas(params, a_hat, x, is_neighbor, pool_mat)
    out = jax.block_until_ready(out)
    assert out.shape == (num_graphs, out_channels)

    ref = gnn_forward_reference(params, a_hat, x, is_neighbor, pool_mat)
    assert bool(jnp.allclose(out, ref, rtol=5e-2, atol=5e-2)), (
        "mismatch vs f32 reference", out, ref)

    print("KERNEL_OK")
</pallas_src>

<mosaic_0001>
module attributes {stable_mosaic.version = 11 : i64} {
  func.func @fused_gnn_kernel(%arg0: i32, %arg1: memref<128x128xbf16, #tpu.memory_space<vmem>>, %arg2: memref<128x128xbf16, #tpu.memory_space<vmem>>, %arg3: memref<3x128x128xbf16, #tpu.memory_space<vmem>>, %arg4: memref<2x1x128xf32, #tpu.memory_space<vmem>>, %arg5: memref<2x128xf32, #tpu.memory_space<vmem>>, %arg6: memref<2x128xf32, #tpu.memory_space<vmem>>, %arg7: memref<2x128xf32, #tpu.memory_space<vmem>>) attributes {dimension_semantics = [#tpu.dimension_semantics<arbitrary>], iteration_bounds = array<i64: 1>, scalar_prefetch = 0 : i64, scratch_operands = 0 : i64, tpu.core_type = #tpu.core_type<tc>, window_params = [{pipeline_mode = #tpu.pipeline_mode<synchronous>, transform_indices = @transform_0, window_bounds = array<i64: 128, 128>}, {pipeline_mode = #tpu.pipeline_mode<synchronous>, transform_indices = @transform_1, window_bounds = array<i64: 128, 128>}, {pipeline_mode = #tpu.pipeline_mode<synchronous>, transform_indices = @transform_2, window_bounds = array<i64: 3, 128, 128>}, {pipeline_mode = #tpu.pipeline_mode<synchronous>, transform_indices = @transform_3, window_bounds = array<i64: 2, 1, 128>}, {pipeline_mode = #tpu.pipeline_mode<synchronous>, transform_indices = @transform_4, window_bounds = array<i64: 2, 128>}, {pipeline_mode = #tpu.pipeline_mode<synchronous>, transform_indices = @transform_5, window_bounds = array<i64: 2, 128>}, {pipeline_mode = #tpu.pipeline_mode<synchronous>, transform_indices = @transform_6, window_bounds = array<i64: 2, 128>}]} {
    %c0 = arith.constant 0 : index
    %c0_0 = arith.constant 0 : index
    %0 = vector.load %arg1[%c0, %c0_0] : memref<128x128xbf16, #tpu.memory_space<vmem>>, vector<128x128xbf16>
    %c0_1 = arith.constant 0 : index
    %c0_2 = arith.constant 0 : index
    %1 = vector.load %arg2[%c0_1, %c0_2] : memref<128x128xbf16, #tpu.memory_space<vmem>>, vector<128x128xbf16>
    %c0_3 = arith.constant 0 : index
    %c0_4 = arith.constant 0 : index
    %c0_5 = arith.constant 0 : index
    %2 = vector.load %arg3[%c0_3, %c0_4, %c0_5] : memref<3x128x128xbf16, #tpu.memory_space<vmem>>, vector<1x128x128xbf16>
    %3 = vector.shape_cast %2 : vector<1x128x128xbf16> to vector<128x128xbf16>
    %cst = arith.constant dense<0.000000e+00> : vector<128x128xf32>
    %4 = tpu.matmul %1, %3, %cst {dimension_numbers = #tpu.dot_dimension_numbers<[1], [0], [0], [1], [0, 0, 1, 1], [], []>} : vector<128x128xbf16>, vector<128x128xbf16>, vector<128x128xf32> -> vector<128x128xf32>
    %5 = arith.truncf %4 : vector<128x128xf32> to vector<128x128xbf16>
    %cst_6 = arith.constant dense<0.000000e+00> : vector<128x128xf32>
    %6 = tpu.matmul %0, %5, %cst_6 {dimension_numbers = #tpu.dot_dimension_numbers<[1], [0], [0], [1], [0, 0, 1, 1], [], []>} : vector<128x128xbf16>, vector<128x128xbf16>, vector<128x128xf32> -> vector<128x128xf32>
    %c0_7 = arith.constant 0 : index
    %c0_8 = arith.constant 0 : index
    %c0_9 = arith.constant 0 : index
    %7 = vector.load %arg4[%c0_7, %c0_8, %c0_9] : memref<2x1x128xf32, #tpu.memory_space<vmem>>, vector<1x1x128xf32>
    %8 = vector.shape_cast %7 : vector<1x1x128xf32> to vector<1x128xf32>
    %9 = vector.broadcast %8 : vector<1x128xf32> to vector<128x128xf32>
    %10 = arith.addf %6, %9 : vector<128x128xf32>
    %cst_10 = arith.constant 0.000000e+00 : f32
    %11 = vector.broadcast %cst_10 : f32 to vector<128x128xf32>
    %12 = arith.maximumf %10, %11 : vector<128x128xf32>
    %13 = arith.truncf %12 : vector<128x128xf32> to vector<128x128xbf16>
    %c1 = arith.constant 1 : index
    %c0_11 = arith.constant 0 : index
    %c0_12 = arith.constant 0 : index
    %14 = vector.load %arg3[%c1, %c0_11, %c0_12] : memref<3x128x128xbf16, #tpu.memory_space<vmem>>, vector<1x128x128xbf16>
    %15 = vector.shape_cast %14 : vector<1x128x128xbf16> to vector<128x128xbf16>
    %cst_13 = arith.constant dense<0.000000e+00> : vector<128x128xf32>
    %16 = tpu.matmul %13, %15, %cst_13 {dimension_numbers = #tpu.dot_dimension_numbers<[1], [0], [0], [1], [0, 0, 1, 1], [], []>} : vector<128x128xbf16>, vector<128x128xbf16>, vector<128x128xf32> -> vector<128x128xf32>
    %17 = arith.truncf %16 : vector<128x128xf32> to vector<128x128xbf16>
    %cst_14 = arith.constant dense<0.000000e+00> : vector<128x128xf32>
    %18 = tpu.matmul %0, %17, %cst_14 {dimension_numbers = #tpu.dot_dimension_numbers<[1], [0], [0], [1], [0, 0, 1, 1], [], []>} : vector<128x128xbf16>, vector<128x128xbf16>, vector<128x128xf32> -> vector<128x128xf32>
    %c1_15 = arith.constant 1 : index
    %c0_16 = arith.constant 0 : index
    %c0_17 = arith.constant 0 : index
    %19 = vector.load %arg4[%c1_15, %c0_16, %c0_17] : memref<2x1x128xf32, #tpu.memory_space<vmem>>, vector<1x1x128xf32>
    %20 = vector.shape_cast %19 : vector<1x1x128xf32> to vector<1x128xf32>
    %21 = vector.broadcast %20 : vector<1x128xf32> to vector<128x128xf32>
    %22 = arith.addf %18, %21 : vector<128x128xf32>
    %cst_18 = arith.constant 0.000000e+00 : f32
    %23 = vector.broadcast %cst_18 : f32 to vector<128x128xf32>
    %24 = arith.maximumf %22, %23 : vector<128x128xf32>
    %25 = arith.truncf %24 : vector<128x128xf32> to vector<128x128xbf16>
    %c2 = arith.constant 2 : index
    %c0_19 = arith.constant 0 : index
    %c0_20 = arith.constant 0 : index
    %26 = vector.load %arg3[%c2, %c0_19, %c0_20] : memref<3x128x128xbf16, #tpu.memory_space<vmem>>, vector<1x128x128xbf16>
    %27 = vector.shape_cast %26 : vector<1x128x128xbf16> to vector<128x128xbf16>
    %cst_21 = arith.constant dense<0.000000e+00> : vector<128x128xf32>
    %28 = tpu.matmul %25, %27, %cst_21 {dimension_numbers = #tpu.dot_dimension_numbers<[1], [0], [0], [1], [0, 0, 1, 1], [], []>} : vector<128x128xbf16>, vector<128x128xbf16>, vector<128x128xf32> -> vector<128x128xf32>
    %c0_22 = arith.constant 0 : index
    %c0_23 = arith.constant 0 : index
    %29 = vector.load %arg5[%c0_22, %c0_23] : memref<2x128xf32, #tpu.memory_space<vmem>>, vector<2x128xf32>
    %cst_24 = arith.constant dense<0.000000e+00> : vector<2x128xf32>
    %30 = tpu.matmul %29, %28, %cst_24 {dimension_numbers = #tpu.dot_dimension_numbers<[1], [0], [0], [1], [0, 0, 1, 1], [], []>} : vector<2x128xf32>, vector<128x128xf32>, vector<2x128xf32> -> vector<2x128xf32>
    %c0_25 = arith.constant 0 : index
    %c0_26 = arith.constant 0 : index
    %31 = vector.load %arg6[%c0_25, %c0_26] : memref<2x128xf32, #tpu.memory_space<vmem>>, vector<2x128xf32>
    %32 = arith.addf %30, %31 : vector<2x128xf32>
    %c0_27 = arith.constant 0 : index
    %c0_28 = arith.constant 0 : index
    %33 = vector.load %arg7[%c0_27, %c0_28] : memref<2x128xf32, #tpu.memory_space<vmem>>, vector<2x128xf32>
    tpu.vector_store %arg7[%c0_27, %c0_28], %32 {strides = array<i32>} : memref<2x128xf32, #tpu.memory_space<vmem>>, vector<2x128xf32>,
    return
  }
  func.func @transform_0(%arg0: i32) -> (i32, i32) {
    %c0_i32 = arith.constant 0 : i32
    %c0_i32_0 = arith.constant 0 : i32
    %c0_i32_1 = arith.constant 0 : i32
    return %c0_i32, %c0_i32_0 : i32, i32
  }
  func.func @transform_1(%arg0: i32) -> (i32, i32) {
    %c0_i32 = arith.constant 0 : i32
    %c0_i32_0 = arith.constant 0 : i32
    %c0_i32_1 = arith.constant 0 : i32
    return %c0_i32, %c0_i32_0 : i32, i32
  }
  func.func @transform_2(%arg0: i32) -> (i32, i32, i32) {
    %c0_i32 = arith.constant 0 : i32
    %c0_i32_0 = arith.constant 0 : i32
    %c0_i32_1 = arith.constant 0 : i32
    %c0_i32_2 = arith.constant 0 : i32
    return %c0_i32, %c0_i32_0, %c0_i32_1 : i32, i32, i32
  }
  func.func @transform_3(%arg0: i32) -> (i32, i32, i32) {
    %c0_i32 = arith.constant 0 : i32
    %c0_i32_0 = arith.constant 0 : i32
    %c0_i32_1 = arith.constant 0 : i32
    %c0_i32_2 = arith.constant 0 : i32
    return %c0_i32, %c0_i32_0, %c0_i32_1 : i32, i32, i32
  }
  func.func @transform_4(%arg0: i32) -> (i32, i32) {
    %c0_i32 = arith.constant 0 : i32
    %c0_i32_0 = arith.constant 0 : i32
    %c0_i32_1 = arith.constant 0 : i32
    return %c0_i32, %c0_i32_0 : i32, i32
  }
  func.func @transform_5(%arg0: i32) -> (i32, i32) {
    %c0_i32 = arith.constant 0 : i32
    %c0_i32_0 = arith.constant 0 : i32
    %c0_i32_1 = arith.constant 0 : i32
    return %c0_i32, %c0_i32_0 : i32, i32
  }
  func.func @transform_6(%arg0: i32) -> (i32, i32) {
    %c0_i32 = arith.constant 0 : i32
    %c0_i32_0 = arith.constant 0 : i32
    %c0_i32_1 = arith.constant 0 : i32
    return %c0_i32, %c0_i32_0 : i32, i32
  }
}

</mosaic_0001>

<bundles_post_ra>
// kernel: _gnn_forward_impl.1
= control target key start
LH: loop header
LB: loop body
LE: loop exit
PB: predicated region body
PF: predicated region fallthrough
CT: control target
= control target key end

     0   :  { %s1192_s0 = inlined_call_operand.vmem [shape: bf16[128,128], index: 0, kind: input, shape index: {}]   ;;  %s1193_s1 = inlined_call_operand.vmem [shape: bf16[128,128], index: 1, kind: input, shape index: {}]   ;;  %s1194_s2 = inlined_call_operand.vmem [shape: bf16[3,128,128], index: 2, kind: input, shape index: {}]   ;;  %s1195_s3 = inlined_call_operand.vmem [shape: f32[2,1,128], index: 3, kind: input, shape index: {}]   ;;  %s1196_s4 = inlined_call_operand.vmem [shape: f32[2,128], index: 4, kind: input, shape index: {}]   ;;  %s1197_s5 = inlined_call_operand.vmem [shape: f32[2,128], index: 5, kind: input, shape index: {}]   ;;  %s1198_s6 = inlined_call_operand.hbm [shape: f32[2,128], index: 6, kind: output, shape index: {}]  }
   0x1   :  { %v919_v0 = vld [vmem:[%s1194_s2 + $0x38] sm:$0xff]  ;;  %v918_v1 = vld [vmem:[%s1194_s2 + $0x30] sm:$0xff] }
   0x2   :  { %938 = vmatpush.bf16.msra.mxu3 %v919_v0  ;;  %937 = vmatpush.bf16.msra.mxu2 %v919_v0 }
   0x3   :  { %168 = vmatpush.bf16.msra.mxu0 %v919_v0  ;;  %936 = vmatpush.bf16.msra.mxu1 %v919_v0 }
   0x4   :  { %11 = vsyncpa [#allocation3], 0  ;;  %v917_v2 = vld [vmem:[%s1194_s2 + $0x28] sm:$0xff]  ;;  %v916_v3 = vld [vmem:[%s1194_s2 + $0x20] sm:$0xff]  ;;  %s989_s7 = smov [#allocation2]   ;;  %s694_s11 = sshll.u32 %s1198_s6, 4  ;;  %s695_s11 = int_to_ptr.hbm [resolvable:$true] %s694_s11 }
   0x5   :  { %v915_v4 = vld [vmem:[%s1194_s2 + $0x18] sm:$0xff]  ;;  %v914_v5 = vld [vmem:[%s1194_s2 + $0x10] sm:$0xff]  ;;  %v913_v6 = vld [vmem:[%s1194_s2 + $0x8] sm:$0xff]  ;;  %s692_s8 = sshll.u32 %s989_s7, 4  ;;  %s693_s8 = int_to_ptr.vmem [resolvable:$true] %s692_s8 }
   0x6   :  { %941 = vmatpush.bf16.msra.mxu3 %v918_v1  ;;  %940 = vmatpush.bf16.msra.mxu2 %v918_v1  ;;  %v912_v7 = vld [vmem:[%s1194_s2] sm:$0xff]  ;;  %v909_v8 = vld [vmem:[%s1193_s1 + $0x28] sm:$0xff]  ;;  %v907_v9 = vld [vmem:[%s1193_s1 + $0x18] sm:$0xff] }
   0x7   :  { %169 = vmatpush.bf16.msra.mxu0 %v918_v1  ;;  %939 = vmatpush.bf16.msra.mxu1 %v918_v1  ;;  %v904_v10 = vld [vmem:[%s1193_s1] sm:$0xff]  ;;  %v906_v11 = vld [vmem:[%s1193_s1 + $0x10] sm:$0xff]  ;;  %v905_v14 = vld [vmem:[%s1193_s1 + $0x8] sm:$0xff] }
   0x8   :  { %v910_v12 = vld [vmem:[%s1193_s1 + $0x30] sm:$0xff]  ;;  %v908_v13 = vld [vmem:[%s1193_s1 + $0x20] sm:$0xff]  ;;  %v911_v15 = vld [vmem:[%s1193_s1 + $0x38] sm:$0xff] }
   0x9   :  { %v1076_v40 = vld [vmem:[%s1192_s0] sm:$0xff]  ;;  %v1082_v41 = vld [vmem:[%s1192_s0 + $0x8] sm:$0xff]  ;;  %v1088_v42 = vld [vmem:[%s1192_s0 + $0x10] sm:$0xff] }
   0xa   :  { %944 = vmatpush.bf16.msra.mxu3 %v917_v2  ;;  %943 = vmatpush.bf16.msra.mxu2 %v917_v2  ;;  %v1094_v43 = vld [vmem:[%s1192_s0 + $0x18] sm:$0xff]  ;;  %v1100_v44 = vld [vmem:[%s1192_s0 + $0x20] sm:$0xff]  ;;  %v1109_v46 = vld [vmem:[%s1192_s0 + $0x28] sm:$0xff] }
   0xb   :  { %170 = vmatpush.bf16.msra.mxu0 %v917_v2  ;;  %942 = vmatpush.bf16.msra.mxu1 %v917_v2  ;;  %v927_v45 = vld [vmem:[%s1194_s2 + $0x78] sm:$0xff]  ;;  %v926_v47 = vld [vmem:[%s1194_s2 + $0x70] sm:$0xff]  ;;  %v925_v48 = vld [vmem:[%s1194_s2 + $0x68] sm:$0xff] }
   0xc   :  { %v924_v49 = vld [vmem:[%s1194_s2 + $0x60] sm:$0xff]  ;;  %v923_v50 = vld [vmem:[%s1194_s2 + $0x58] sm:$0xff]  ;;  %v1127_v51 = vld [vmem:[%s1192_s0 + $0x30] sm:$0xff] }
   0xd   :  { %v922_v52 = vld [vmem:[%s1194_s2 + $0x50] sm:$0xff]  ;;  %v921_v53 = vld [vmem:[%s1194_s2 + $0x48] sm:$0xff]  ;;  %v920_v54 = vld [vmem:[%s1194_s2 + $0x40] sm:$0xff] }
   0xe   :  { %947 = vmatpush.bf16.msra.mxu3 %v916_v3  ;;  %946 = vmatpush.bf16.msra.mxu2 %v916_v3  ;;  %v1142_v55 = vld [vmem:[%s1192_s0 + $0x38] sm:$0xff]  ;;  %v961_v57 = vld [vmem:[%s1195_s3] ss:$0 sm:$0xff] }
   0xf   :  { %171 = vmatpush.bf16.msra.mxu0 %v916_v3  ;;  %945 = vmatpush.bf16.msra.mxu1 %v916_v3 }
  0x12   :  { %950 = vmatpush.bf16.msra.mxu3 %v915_v4  ;;  %949 = vmatpush.bf16.msra.mxu2 %v915_v4 }
  0x13   :  { %172 = vmatpush.bf16.msra.mxu0 %v915_v4  ;;  %948 = vmatpush.bf16.msra.mxu1 %v915_v4 }
  0x16   :  { %953 = vmatpush.bf16.msra.mxu3 %v914_v5  ;;  %952 = vmatpush.bf16.msra.mxu2 %v914_v5 }
  0x17   :  { %173 = vmatpush.bf16.msra.mxu0 %v914_v5  ;;  %951 = vmatpush.bf16.msra.mxu1 %v914_v5 }
  0x1a   :  { %956 = vmatpush.bf16.msra.mxu3 %v913_v6  ;;  %955 = vmatpush.bf16.msra.mxu2 %v913_v6 }
  0x1b   :  { %174 = vmatpush.bf16.msra.mxu0 %v913_v6  ;;  %954 = vmatpush.bf16.msra.mxu1 %v913_v6 }
  0x1e   :  { %959 = vmatpush.bf16.msra.mxu3 %v912_v7  ;;  %958 = vmatpush.bf16.msra.mxu2 %v912_v7 }
  0x1f   :  { %175 = vmatpush.bf16.msra.mxu0 %v912_v7  ;;  %957 = vmatpush.bf16.msra.mxu1 %v912_v7 }
  0x21   :  { %201 = vmatmul.bf16.vlgmr.msra.gmra.mxu3 %v909_v8  ;;  %191 = vmatmul.bf16.vlgmr.msra.gmra.mxu2 %v907_v9 }
  0x22   :  { %176 = vmatmul.bf16.vlgmr.msra.gmra.mxu0 %v904_v10  ;;  %186 = vmatmul.bf16.vlgmr.msra.gmra.mxu1 %v906_v11 }
  0x23   :  { %415 = vmatpush.bf16.msrb.mxu2 %v927_v45 }
  0x27   :  { %416 = vmatpush.bf16.msrb.mxu2 %v926_v47 }
  0x2b   :  { %417 = vmatpush.bf16.msrb.mxu2 %v925_v48 }
  0x2f   :  { %418 = vmatpush.bf16.msrb.mxu2 %v924_v49 }
  0x31   :  { %206 = vmatmul.bf16.gmra.mxu3 %v910_v12  ;;  %196 = vmatmul.bf16.gmra.mxu2 %v908_v13 }
  0x32   :  { %181 = vmatmul.bf16.gmra.mxu0 %v905_v14 }
  0x33   :  { %419 = vmatpush.bf16.msrb.mxu2 %v923_v50 }
  0x37   :  { %420 = vmatpush.bf16.msrb.mxu2 %v922_v52 }
  0x3b   :  { %421 = vmatpush.bf16.msrb.mxu2 %v921_v53 }
  0x3f   :  { %422 = vmatpush.bf16.msrb.mxu2 %v920_v54 }
  0x41   :  { %211 = vmatmul.bf16.gmra.mxu3 %v911_v15 }
  0x9f   :  { %v177_v22 = vpop.f32.mrf.mxu0  ;;  %v187_v29 = vpop.f32.mrf.mxu1 }
  0xa4   :  { %v202_v16 = vpop.f32.mrf.mxu3  ;;  %v192_v19 = vpop.f32.mrf.mxu2 }
  0xa7   :  { %v179_v27 = vpop.f32.mrf.mxu0  ;;  %v189_v35 = vpop.f32.mrf.mxu1 }
  0xa8   :  { %v219_v36 = vpack.c.bf16 %v189_v35, %v187_v29  ;;  %v217_v39 = vpack.c.bf16 %v179_v27, %v177_v22 }
  0xac   :  { %v204_v17 = vpop.f32.mrf.mxu3  ;;  %v194_v21 = vpop.f32.mrf.mxu2 }
  0xad   :  { %v222_v30 = vpack.c.bf16 %v204_v17, %v202_v16  ;;  %v220_v34 = vpack.c.bf16 %v194_v21, %v192_v19 }
  0xaf   :  { %v182_v32 = vpop.f32.mrf.mxu0 }
  0xb4   :  { %v207_v18 = vpop.f32.mrf.mxu3  ;;  %v197_v24 = vpop.f32.mrf.mxu2 }
  0xb7   :  { %v184_v37 = vpop.f32.mrf.mxu0 }
  0xb8   :  { %v218_v38 = vpack.c.bf16 %v184_v37, %v182_v32 }
  0xbc   :  { %v209_v20 = vpop.f32.mrf.mxu3  ;;  %v199_v31 = vpop.f32.mrf.mxu2 }
  0xbd   :  { %v223_v28 = vpack.c.bf16 %v209_v20, %v207_v18  ;;  %v221_v33 = vpack.c.bf16 %v199_v31, %v197_v24 }
  0xc4   :  { %v212_v23 = vpop.f32.mrf.mxu3 }
  0xcc   :  { %v214_v25 = vpop.f32.mrf.mxu3 }
  0xcd   :  { %v224_v26 = vpack.c.bf16 %v214_v25, %v212_v23 }
  0xcf   :  { %277 = vmatpush.bf16.msrb.mxu1 %v224_v26 }
  0xd3   :  { %278 = vmatpush.bf16.msrb.mxu1 %v223_v28 }
  0xd7   :  { %279 = vmatpush.bf16.msrb.mxu1 %v222_v30 }
  0xdb   :  { %280 = vmatpush.bf16.msrb.mxu1 %v221_v33 }
  0xdf   :  { %281 = vmatpush.bf16.msrb.mxu1 %v220_v34 }
  0xe3   :  { %282 = vmatpush.bf16.msrb.mxu1 %v219_v36 }
  0xe7   :  { %283 = vmatpush.bf16.msrb.mxu1 %v218_v38 }
  0xeb   :  { %284 = vmatpush.bf16.msrb.mxu1 %v217_v39 }
  0xee   :  { %285 = vmatmul.bf16.vlgmr.msrb.gmra.mxu1 %v1076_v40 }
  0xfe   :  { %290 = vmatmul.bf16.gmra.mxu1 %v1082_v41 }
 0x10e   :  { %295 = vmatmul.bf16.gmra.mxu1 %v1088_v42 }
 0x11e   :  { %300 = vmatmul.bf16.gmra.mxu1 %v1094_v43 }
 0x12e   :  { %305 = vmatmul.bf16.gmra.mxu1 %v1100_v44 }
 0x13e   :  { %310 = vmatmul.bf16.gmra.mxu1 %v1109_v46 }
 0x14e   :  { %315 = vmatmul.bf16.gmra.mxu1 %v1127_v51 }
 0x15e   :  { %320 = vmatmul.bf16.gmra.mxu1 %v1142_v55 }
 0x16b   :  { %v286_v56 = vpop.f32.mrf.mxu1 }
 0x16c   :  { %v287_v58 = vadd.f32 %v961_v57, %v286_v56 }
 0x16e   :  { %v326_v61 = vmax.f32 %v287_v58, 0.0 }
 0x173   :  { %v288_v59 = vpop.f32.mrf.mxu1 }
 0x174   :  { %v289_v60 = vadd.f32 %v961_v57, %v288_v59 }
 0x176   :  { %v327_v62 = vmax.f32 %v289_v60, 0.0 }
 0x178   :  { %v342_v63 = vpack.c.bf16 %v327_v62, %v326_v61 }
 0x17a   :  { %423 = vmatmul.bf16.vlgmr.msrb.gmra.mxu2 %v342_v63 }
 0x17b   :  { %v291_v0 = vpop.f32.mrf.mxu1 }
 0x17c   :  { %v292_v1 = vadd.f32 %v961_v57, %v291_v0 }
 0x17e   :  { %v328_v4 = vmax.f32 %v292_v1, 0.0 }
 0x183   :  { %v293_v2 = vpop.f32.mrf.mxu1 }
 0x184   :  { %v294_v3 = vadd.f32 %v961_v57, %v293_v2 }
 0x186   :  { %v329_v5 = vmax.f32 %v294_v3, 0.0 }
 0x188   :  { %v343_v6 = vpack.c.bf16 %v329_v5, %v328_v4 }
 0x18a   :  { %428 = vmatmul.bf16.gmra.mxu2 %v343_v6 }
 0x18b   :  { %v296_v7 = vpop.f32.mrf.mxu1 }
 0x18c   :  { %v297_v8 = vadd.f32 %v961_v57, %v296_v7 }
 0x18e   :  { %v330_v11 = vmax.f32 %v297_v8, 0.0 }
 0x193   :  { %v298_v9 = vpop.f32.mrf.mxu1 }
 0x194   :  { %v299_v10 = vadd.f32 %v961_v57, %v298_v9 }
 0x196   :  { %v331_v12 = vmax.f32 %v299_v10, 0.0 }
 0x198   :  { %v344_v13 = vpack.c.bf16 %v331_v12, %v330_v11 }
 0x19a   :  { %433 = vmatmul.bf16.gmra.mxu2 %v344_v13 }
 0x19b   :  { %v301_v14 = vpop.f32.mrf.mxu1 }
 0x19c   :  { %v302_v15 = vadd.f32 %v961_v57, %v301_v14 }
 0x19e   :  { %v332_v18 = vmax.f32 %v302_v15, 0.0 }
 0x1a3   :  { %v303_v16 = vpop.f32.mrf.mxu1 }
 0x1a4   :  { %v304_v17 = vadd.f32 %v961_v57, %v303_v16 }
 0x1a6   :  { %v333_v19 = vmax.f32 %v304_v17, 0.0  ;;  %v935_v17 = vld [vmem:[%s1194_s2 + $0xb8] sm:$0xff] }
 0x1a7   :  { %615 = vmatpush.bf16.msrb.mxu0 %v935_v17 }
 0x1a8   :  { %v345_v20 = vpack.c.bf16 %v333_v19, %v332_v18  ;;  %v934_v18 = vld [vmem:[%s1194_s2 + $0xb0] sm:$0xff]  ;;  %v962_v19 = vld [vmem:[%s1195_s3 + $0x1] ss:$0 sm:$0xff] }
 0x1aa   :  { %438 = vmatmul.bf16.gmra.mxu2 %v345_v20 }
 0x1ab   :  { %v306_v21 = vpop.f32.mrf.mxu1  ;;  %616 = vmatpush.bf16.msrb.mxu0 %v934_v18 }
 0x1ac   :  { %v307_v22 = vadd.f32 %v961_v57, %v306_v21 }
 0x1ae   :  { %v334_v25 = vmax.f32 %v307_v22, 0.0 }
 0x1b3   :  { %v308_v23 = vpop.f32.mrf.mxu1 }
 0x1b4   :  { %v309_v24 = vadd.f32 %v961_v57, %v308_v23 }
 0x1b6   :  { %v335_v26 = vmax.f32 %v309_v24, 0.0 }
 0x1b8   :  { %v346_v27 = vpack.c.bf16 %v335_v26, %v334_v25 }
 0x1ba   :  { %443 = vmatmul.bf16.gmra.mxu2 %v346_v27 }
 0x1bb   :  { %v311_v28 = vpop.f32.mrf.mxu1 }
 0x1bc   :  { %v312_v29 = vadd.f32 %v961_v57, %v311_v28 }
 0x1be   :  { %v336_v32 = vmax.f32 %v312_v29, 0.0 }
 0x1c3   :  { %v313_v30 = vpop.f32.mrf.mxu1 }
 0x1c4   :  { %v314_v31 = vadd.f32 %v961_v57, %v313_v30 }
 0x1c6   :  { %v337_v33 = vmax.f32 %v314_v31, 0.0 }
 0x1c8   :  { %v347_v34 = vpack.c.bf16 %v337_v33, %v336_v32 }
 0x1ca   :  { %448 = vmatmul.bf16.gmra.mxu2 %v347_v34 }
 0x1cb   :  { %v316_v35 = vpop.f32.mrf.mxu1 }
 0x1cc   :  { %v317_v36 = vadd.f32 %v961_v57, %v316_v35 }
 0x1ce   :  { %v338_v39 = vmax.f32 %v317_v36, 0.0 }
 0x1d3   :  { %v318_v37 = vpop.f32.mrf.mxu1 }
 0x1d4   :  { %v319_v38 = vadd.f32 %v961_v57, %v318_v37 }
 0x1d6   :  { %v339_v45 = vmax.f32 %v319_v38, 0.0 }
 0x1d8   :  { %v348_v47 = vpack.c.bf16 %v339_v45, %v338_v39 }
 0x1da   :  { %453 = vmatmul.bf16.gmra.mxu2 %v348_v47 }
 0x1db   :  { %v321_v48 = vpop.f32.mrf.mxu1 }
 0x1dc   :  { %v322_v49 = vadd.f32 %v961_v57, %v321_v48 }
 0x1de   :  { %v340_v53 = vmax.f32 %v322_v49, 0.0 }
 0x1e3   :  { %v323_v50 = vpop.f32.mrf.mxu1 }
 0x1e4   :  { %v324_v52 = vadd.f32 %v961_v57, %v323_v50 }
 0x1e6   :  { %v341_v54 = vmax.f32 %v324_v52, 0.0 }
 0x1e8   :  { %v349_v56 = vpack.c.bf16 %v341_v54, %v340_v53 }
 0x1ea   :  { %458 = vmatmul.bf16.gmra.mxu2 %v349_v56 }
 0x1fd   :  { %v424_v58 = vpop.f32.mrf.mxu2 }
 0x205   :  { %v426_v59 = vpop.f32.mrf.mxu2 }
 0x206   :  { %v464_v60 = vpack.c.bf16 %v426_v59, %v424_v58 }
 0x20d   :  { %v429_v61 = vpop.f32.mrf.mxu2 }
 0x215   :  { %v431_v62 = vpop.f32.mrf.mxu2 }
 0x216   :  { %v465_v63 = vpack.c.bf16 %v431_v62, %v429_v61 }
 0x21d   :  { %v434_v0 = vpop.f32.mrf.mxu2 }
 0x225   :  { %v436_v1 = vpop.f32.mrf.mxu2 }
 0x226   :  { %v466_v2 = vpack.c.bf16 %v436_v1, %v434_v0 }
 0x22d   :  { %v439_v3 = vpop.f32.mrf.mxu2 }
 0x235   :  { %v441_v4 = vpop.f32.mrf.mxu2 }
 0x236   :  { %v467_v5 = vpack.c.bf16 %v441_v4, %v439_v3 }
 0x23d   :  { %v444_v6 = vpop.f32.mrf.mxu2 }
 0x245   :  { %v446_v7 = vpop.f32.mrf.mxu2 }
 0x246   :  { %v468_v16 = vpack.c.bf16 %v446_v7, %v444_v6 }
 0x24d   :  { %v449_v8 = vpop.f32.mrf.mxu2 }
 0x255   :  { %v451_v57 = vpop.f32.mrf.mxu2 }
 0x256   :  { %v469_v15 = vpack.c.bf16 %v451_v57, %v449_v8 }
 0x25d   :  { %v454_v9 = vpop.f32.mrf.mxu2 }
 0x265   :  { %v456_v10 = vpop.f32.mrf.mxu2 }
 0x266   :  { %v470_v14 = vpack.c.bf16 %v456_v10, %v454_v9 }
 0x26d   :  { %v459_v11 = vpop.f32.mrf.mxu2 }
 0x275   :  { %v461_v12 = vpop.f32.mrf.mxu2 }
 0x276   :  { %v471_v13 = vpack.c.bf16 %v461_v12, %v459_v11 }
 0x278   :  { %477 = vmatpush.bf16.msrb.mxu3 %v471_v13 }
 0x27c   :  { %478 = vmatpush.bf16.msrb.mxu3 %v470_v14 }
 0x280   :  { %479 = vmatpush.bf16.msrb.mxu3 %v469_v15 }
 0x284   :  { %480 = vmatpush.bf16.msrb.mxu3 %v468_v16 }
 0x288   :  { %481 = vmatpush.bf16.msrb.mxu3 %v467_v5 }
 0x28c   :  { %482 = vmatpush.bf16.msrb.mxu3 %v466_v2 }
 0x290   :  { %483 = vmatpush.bf16.msrb.mxu3 %v465_v63 }
 0x294   :  { %484 = vmatpush.bf16.msrb.mxu3 %v464_v60 }
 0x297   :  { %485 = vmatmul.bf16.vlgmr.msrb.gmra.mxu3 %v1076_v40  ;;  %v933_v40 = vld [vmem:[%s1194_s2 + $0xa8] sm:$0xff] }
 0x298   :  { %617 = vmatpush.bf16.msrb.mxu0 %v933_v40 }
 0x2a7   :  { %490 = vmatmul.bf16.gmra.mxu3 %v1082_v41  ;;  %v932_v41 = vld [vmem:[%s1194_s2 + $0xa0] sm:$0xff] }
 0x2a8   :  { %618 = vmatpush.bf16.msrb.mxu0 %v932_v41 }
 0x2b7   :  { %495 = vmatmul.bf16.gmra.mxu3 %v1088_v42  ;;  %v931_v42 = vld [vmem:[%s1194_s2 + $0x98] sm:$0xff] }
 0x2b8   :  { %619 = vmatpush.bf16.msrb.mxu0 %v931_v42 }
 0x2c7   :  { %500 = vmatmul.bf16.gmra.mxu3 %v1094_v43  ;;  %v930_v43 = vld [vmem:[%s1194_s2 + $0x90] sm:$0xff] }
 0x2c8   :  { %620 = vmatpush.bf16.msrb.mxu0 %v930_v43 }
 0x2d7   :  { %505 = vmatmul.bf16.gmra.mxu3 %v1100_v44  ;;  %v929_v44 = vld [vmem:[%s1194_s2 + $0x88] sm:$0xff] }
 0x2d8   :  { %621 = vmatpush.bf16.msrb.mxu0 %v929_v44 }
 0x2e7   :  { %510 = vmatmul.bf16.gmra.mxu3 %v1109_v46  ;;  %v928_v46 = vld [vmem:[%s1194_s2 + $0x80] sm:$0xff] }
 0x2e8   :  { %622 = vmatpush.bf16.msrb.mxu0 %v928_v46 }
 0x2f7   :  { %515 = vmatmul.bf16.gmra.mxu3 %v1127_v51 }
 0x307   :  { %520 = vmatmul.bf16.gmra.mxu3 %v1142_v55 }
 0x31a   :  { %v486_v51 = vpop.f32.mrf.mxu3 }
 0x31b   :  { %v487_v20 = vadd.f32 %v962_v19, %v486_v51 }
 0x31d   :  { %v526_v23 = vmax.f32 %v487_v20, 0.0 }
 0x322   :  { %v488_v21 = vpop.f32.mrf.mxu3 }
 0x323   :  { %v489_v22 = vadd.f32 %v962_v19, %v488_v21 }
 0x325   :  { %v527_v24 = vmax.f32 %v489_v22, 0.0 }
 0x327   :  { %v542_v25 = vpack.c.bf16 %v527_v24, %v526_v23 }
 0x329   :  { %623 = vmatmul.bf16.vlgmr.msrb.gmra.mxu0 %v542_v25 }
 0x32a   :  { %v491_v26 = vpop.f32.mrf.mxu3 }
 0x32b   :  { %v492_v27 = vadd.f32 %v962_v19, %v491_v26 }
 0x32d   :  { %v528_v30 = vmax.f32 %v492_v27, 0.0  ;;  %v664_v27 = vld [vmem:[%s1196_s4] sm:$0x3] }
 0x332   :  { %v493_v28 = vpop.f32.mrf.mxu3 }
 0x333   :  { %v494_v29 = vadd.f32 %v962_v19, %v493_v28  ;;  %v665_v28 = vld [vmem:[%s1197_s5] sm:$0x3] }
 0x335   :  { %v529_v31 = vmax.f32 %v494_v29, 0.0 }
 0x337   :  { %v543_v32 = vpack.c.bf16 %v529_v31, %v528_v30 }
 0x339   :  { %628 = vmatmul.bf16.gmra.mxu0 %v543_v32 }
 0x33a   :  { %v496_v55 = vpop.f32.mrf.mxu3 }
 0x33b   :  { %v497_v33 = vadd.f32 %v962_v19, %v496_v55 }
 0x33d   :  { %v530_v36 = vmax.f32 %v497_v33, 0.0 }
 0x342   :  { %v498_v34 = vpop.f32.mrf.mxu3 }
 0x343   :  { %v499_v35 = vadd.f32 %v962_v19, %v498_v34 }
 0x345   :  { %v531_v37 = vmax.f32 %v499_v35, 0.0 }
 0x347   :  { %v544_v38 = vpack.c.bf16 %v531_v37, %v530_v36 }
 0x349   :  { %633 = vmatmul.bf16.gmra.mxu0 %v544_v38 }
 0x34a   :  { %v501_v39 = vpop.f32.mrf.mxu3 }
 0x34b   :  { %v502_v45 = vadd.f32 %v962_v19, %v501_v39 }
 0x34d   :  { %v532_v49 = vmax.f32 %v502_v45, 0.0 }
 0x352   :  { %v503_v47 = vpop.f32.mrf.mxu3 }
 0x353   :  { %v504_v48 = vadd.f32 %v962_v19, %v503_v47 }
 0x355   :  { %v533_v50 = vmax.f32 %v504_v48, 0.0 }
 0x357   :  { %v545_v52 = vpack.c.bf16 %v533_v50, %v532_v49 }
 0x359   :  { %638 = vmatmul.bf16.gmra.mxu0 %v545_v52 }
 0x35a   :  { %v506_v53 = vpop.f32.mrf.mxu3 }
 0x35b   :  { %v507_v54 = vadd.f32 %v962_v19, %v506_v53 }
 0x35d   :  { %v534_v59 = vmax.f32 %v507_v54, 0.0 }
 0x362   :  { %v508_v56 = vpop.f32.mrf.mxu3 }
 0x363   :  { %v509_v58 = vadd.f32 %v962_v19, %v508_v56 }
 0x365   :  { %v535_v60 = vmax.f32 %v509_v58, 0.0 }
 0x367   :  { %v546_v61 = vpack.c.bf16 %v535_v60, %v534_v59 }
 0x369   :  { %643 = vmatmul.bf16.gmra.mxu0 %v546_v61 }
 0x36a   :  { %v511_v62 = vpop.f32.mrf.mxu3 }
 0x36b   :  { %v512_v63 = vadd.f32 %v962_v19, %v511_v62 }
 0x36d   :  { %v536_v2 = vmax.f32 %v512_v63, 0.0 }
 0x372   :  { %v513_v0 = vpop.f32.mrf.mxu3 }
 0x373   :  { %v514_v1 = vadd.f32 %v962_v19, %v513_v0 }
 0x375   :  { %v537_v3 = vmax.f32 %v514_v1, 0.0 }
 0x377   :  { %v547_v4 = vpack.c.bf16 %v537_v3, %v536_v2 }
 0x379   :  { %648 = vmatmul.bf16.gmra.mxu0 %v547_v4 }
 0x37a   :  { %v516_v5 = vpop.f32.mrf.mxu3 }
 0x37b   :  { %v517_v6 = vadd.f32 %v962_v19, %v516_v5 }
 0x37d   :  { %v538_v57 = vmax.f32 %v517_v6, 0.0 }
 0x382   :  { %v518_v7 = vpop.f32.mrf.mxu3 }
 0x383   :  { %v519_v8 = vadd.f32 %v962_v19, %v518_v7 }
 0x385   :  { %v539_v9 = vmax.f32 %v519_v8, 0.0 }
 0x387   :  { %v548_v10 = vpack.c.bf16 %v539_v9, %v538_v57 }
 0x389   :  { %653 = vmatmul.bf16.gmra.mxu0 %v548_v10 }
 0x38a   :  { %v521_v11 = vpop.f32.mrf.mxu3 }
 0x38b   :  { %v522_v12 = vadd.f32 %v962_v19, %v521_v11 }
 0x38d   :  { %v540_v15 = vmax.f32 %v522_v12, 0.0 }
 0x392   :  { %v523_v13 = vpop.f32.mrf.mxu3 }
 0x393   :  { %v524_v14 = vadd.f32 %v962_v19, %v523_v13 }
 0x395   :  { %v541_v16 = vmax.f32 %v524_v14, 0.0 }
 0x397   :  { %v549_v17 = vpack.c.bf16 %v541_v16, %v540_v15 }
 0x399   :  { %658 = vmatmul.bf16.gmra.mxu0 %v549_v17 }
 0x3a6   :  { %v624_v18 = vpop.f32.mrf.mxu0 }
 0x3ae   :  { %v626_v40 = vpop.f32.mrf.mxu0 }
 0x3b6   :  { %v629_v41 = vpop.f32.mrf.mxu0 }
 0x3be   :  { %v631_v42 = vpop.f32.mrf.mxu0 }
 0x3c6   :  { %v634_v43 = vpop.f32.mrf.mxu0 }
 0x3ce   :  { %v636_v44 = vpop.f32.mrf.mxu0 }
 0x3d6   :  { %v639_v46 = vpop.f32.mrf.mxu0 }
 0x3de   :  { %v641_v51 = vpop.f32.mrf.mxu0 }
 0x3e6   :  { %v644_v20 = vpop.f32.mrf.mxu0 }
 0x3ee   :  { %v646_v21 = vpop.f32.mrf.mxu0 }
 0x3f6   :  { %v649_v22 = vpop.f32.mrf.mxu0 }
 0x3fe   :  { %v651_v23 = vpop.f32.mrf.mxu0 }
 0x406   :  { %v654_v24 = vpop.f32.mrf.mxu0 }
 0x40e   :  { %v656_v25 = vpop.f32.mrf.mxu0 }
 0x416   :  { %v659_v26 = vpop.f32.mrf.mxu0 }
 0x41e   :  { %v661_v19 = vpop.f32.mrf.mxu0 }
 0x41f   :  { %666 = vmatpush.msra.mxu1 %v661_v19 }
 0x421   :  { %667 = vmatpush.msra.mxu1 %v659_v26 }
 0x423   :  { %668 = vmatpush.msra.mxu1 %v656_v25 }
 0x425   :  { %669 = vmatpush.msra.mxu1 %v654_v24 }
 0x427   :  { %670 = vmatpush.msra.mxu1 %v651_v23 }
 0x429   :  { %671 = vmatpush.msra.mxu1 %v649_v22 }
 0x42b   :  { %672 = vmatpush.msra.mxu1 %v646_v21 }
 0x42d   :  { %673 = vmatpush.msra.mxu1 %v644_v20 }
 0x42f   :  { %674 = vmatpush.msra.mxu1 %v641_v51 }
 0x431   :  { %675 = vmatpush.msra.mxu1 %v639_v46 }
 0x433   :  { %676 = vmatpush.msra.mxu1 %v636_v44 }
 0x435   :  { %677 = vmatpush.msra.mxu1 %v634_v43 }
 0x437   :  { %678 = vmatpush.msra.mxu1 %v631_v42 }
 0x439   :  { %679 = vmatpush.msra.mxu1 %v629_v41 }
 0x43b   :  { %680 = vmatpush.msra.mxu1 %v626_v40 }
 0x43d   :  { %681 = vmatpush.msra.mxu1 %v624_v18 }
 0x43e   :  { %682 = vmatmul.f32.vlgmr.msra.gmra.mxu1 %v664_v27 }
 0x4bb   :  { %v683_v29 = vpop.f32.mrf.mxu1 }
 0x4bc   :  { %v684_v30 = vadd.f32 %v683_v29, %v665_v28 }
 0x4be   :  { %686 = vst [vmem:[#allocation2] sm:$0x3] %v684_v30 }
 0x4bf   :  { %697 = dma.vmem_to_hbm [thread:$0]  %s693_s8, 32, %s695_s11, [#allocation3]  }
 0x4c0   :  { %987 = dma.done.wait [#allocation3], 32  }
 0x4c1   :  { %988 = vsyncadd [#allocation3], 4294967264 }
 0x4c2   :  { %702 = vsyncpa [#allocation3], 1 }

</bundles_post_ra>
